<compile_context>
chip_gen: v7x
topology: tpu7x:2x2x1
jax: 0.10.0
libtpu: 0.0.40
codegen_flags: <defaults>
</compile_context>

<pallas_src>
import functools

import jax
import jax.numpy as jnp
from jax.experimental import pallas as pl
from jax.experimental.pallas import tpu as pltpu


def _supcon_kernel(fq_ref, fall_ref, lq_ref, lall_ref, o_ref, acc_ref,
                   *, inv_temp, n_total, block_rows, num_classes):
    i = pl.program_id(0)

    @pl.when(i == 0)
    def _():
        acc_ref[...] = jnp.zeros_like(acc_ref)

    # ---- anchor_dot_contrast for this row block (temperature folded into operand) ----
    fq = fq_ref[...] * inv_temp                                  # [tm, D] bf16, O(tm*D)
    adc = jax.lax.dot_general(                                   # [tm, B] f32 accumulation
        fq, fall_ref[...], (((1,), (1,)), ((), ())),
        preferred_element_type=jnp.float32)

    # ---- boolean masks (no int casts, no f32 off-diagonal materialization) ----
    rows = i * block_rows + jax.lax.broadcasted_iota(
        jnp.int32, (block_rows, n_total), 0)
    cols = jax.lax.broadcasted_iota(jnp.int32, (block_rows, n_total), 1)
    off_diag = rows != cols                                      # logits_mask (bool)

    gram = jax.lax.dot_general(                                  # labels @ labels.T [tm, B]
        lq_ref[...], lall_ref[...], (((1,), (1,)), ((), ())),
        preferred_element_type=jnp.float32)
    # torch: uint8 trunc (mod 256) + clip(>1 -> 1) + zero diagonal.
    # Counts are bounded by num_classes, so the mod is only needed (and emitted)
    # when a wrap is actually reachable.
    if num_classes >= 256:
        gram = jnp.mod(gram, 256.0)
    # TODO(synk): counts >= 2^24 would lose f32 integer exactness; not emulated.
    pos = jnp.logical_and(gram >= 1.0, off_diag)                 # mask_labels (bool)

    # ---- row-wise log-softmax over the full contrast dimension ----
    logits = adc - jnp.max(adc, axis=1, keepdims=True)
    exp_logits = jnp.where(off_diag, jnp.exp(logits), 0.0)
    log_prob = logits - jnp.log(
        jnp.sum(exp_logits, axis=1, keepdims=True) + 1e-12)

    pos_logprob = jnp.sum(jnp.where(pos, log_prob, 0.0), axis=1, keepdims=True)  # [tm,1]
    num_pos = jnp.sum(jnp.where(pos, 1.0, 0.0), axis=1, keepdims=True)           # [tm,1]
    mean_log_prob_pos = pos_logprob * pl.reciprocal(num_pos + 1e-12, approx=True)

    acc_ref[...] += jnp.sum(mean_log_prob_pos, keepdims=True)

    @pl.when(i == pl.num_programs(0) - 1)
    def _():
        o_ref[...] = acc_ref[...] * (-1.0 / float(n_total))


def _pick_block_rows(n, target=256):
    """Largest multiple-of-16 divisor of n up to `target` (bf16-tile friendly), else n."""
    if n <= target:
        return n
    for tm in (256, 128, 64, 32, 16):
        if tm <= target and n % tm == 0:
            return tm
    return n  # fallback: single block


@functools.partial(jax.jit, static_argnames=("temperature", "block_rows"))
def supcon_loss(features, labels, temperature=100.0, block_rows=None):
    if features.ndim > 2:
        features = features.reshape(features.shape[0], -1)
    n, d = features.shape
    c = labels.shape[-1]
    labels = labels.reshape(n, c)

    # bf16 MXU operands (labels are {0,1} -> exact products); accumulation is f32.
    feat = features.astype(jnp.bfloat16)
    lab = labels.astype(jnp.bfloat16)

    if block_rows is None:
        tm = _pick_block_rows(n)
    else:
        tm = int(block_rows)
        if n % tm != 0 or not (tm == n or tm % 16 == 0):
            raise ValueError("block_rows must divide batch and be a multiple of 16")
    n_blocks = n // tm

    # TODO(synk): for batches where the full [B, D] / [B, C] operands no longer fit
    # VMEM, add a second grid axis over contrast-column blocks with an online
    # (flash-style) running max / log-sum-exp.
    kernel = functools.partial(
        _supcon_kernel,
        inv_temp=1.0 / float(temperature), n_total=n, block_rows=tm, num_classes=c)

    out = pl.pallas_call(
        kernel,
        out_shape=jax.ShapeDtypeStruct((1, 1), jnp.float32),
        grid_spec=pltpu.PrefetchScalarGridSpec(
            num_scalar_prefetch=0,
            grid=(n_blocks,),
            in_specs=[
                pl.BlockSpec((tm, d), lambda i: (i, 0)),   # anchor feature rows
                pl.BlockSpec((n, d), lambda i: (0, 0)),    # all features (VMEM-resident)
                pl.BlockSpec((tm, c), lambda i: (i, 0)),   # anchor label rows
                pl.BlockSpec((n, c), lambda i: (0, 0)),    # all labels (VMEM-resident)
            ],
            out_specs=pl.BlockSpec((1, 1), lambda i: (0, 0)),
            scratch_shapes=[pltpu.VMEM((1, 1), jnp.float32)],
        ),
        compiler_params=pltpu.CompilerParams(
            dimension_semantics=("arbitrary",),        # scalar accumulator across row blocks
            vmem_limit_bytes=32 * 1024 * 1024),
    )(feat, feat, lab, lab)
    return out[0, 0]


def _supcon_reference(features, labels, temperature=100.0):
    """Pure-JAX f32 reference matching the PyTorch module."""
    feats = features.reshape(features.shape[0], -1).astype(jnp.float32)
    lab = labels.astype(jnp.float32)
    n = feats.shape[0]
    logits_mask = 1.0 - jnp.eye(n, dtype=jnp.float32)
    mask = (lab @ lab.T >= 1.0).astype(jnp.float32) * logits_mask
    adc = (feats @ feats.T) / temperature
    logits = adc - jnp.max(adc, axis=1, keepdims=True)
    exp_logits = jnp.exp(logits) * logits_mask
    log_prob = logits - jnp.log(jnp.sum(exp_logits, axis=1, keepdims=True) + 1e-12)
    mlpp = jnp.sum(mask * log_prob, axis=1) / (jnp.sum(mask, axis=1) + 1e-12)
    return -jnp.mean(mlpp)


if __name__ == "__main__":
    B, C, D = 32, 8, 32   # batch, num multi-hot label classes, embedding dim
    key = jax.random.PRNGKey(0)
    kf, kl = jax.random.split(key)
    features = jax.random.normal(kf, (B, D), dtype=jnp.float32)
    labels = jax.random.bernoulli(kl, 0.5, (B, C)).astype(jnp.float32)

    loss = supcon_loss(features, labels)                         # single row block
    loss_blocked = supcon_loss(features, labels, block_rows=16)  # 2-step grid + accumulator
    jax.block_until_ready((loss, loss_blocked))

    ref = _supcon_reference(features, labels, temperature=100.0)
    assert loss.shape == () and bool(jnp.isfinite(loss))
    assert bool(jnp.allclose(loss, ref, rtol=5e-2, atol=1e-2)), (loss, ref)
    assert bool(jnp.allclose(loss_blocked, ref, rtol=5e-2, atol=1e-2)), (loss_blocked, ref)
    print("KERNEL_OK")
</pallas_src>

<mosaic_0001>
module attributes {stable_mosaic.version = 11 : i64} {
  func.func @_supcon_kernel(%arg0: i32, %arg1: memref<32x32xbf16, #tpu.memory_space<vmem>>, %arg2: memref<32x32xbf16, #tpu.memory_space<vmem>>, %arg3: memref<32x8xbf16, #tpu.memory_space<vmem>>, %arg4: memref<32x8xbf16, #tpu.memory_space<vmem>>, %arg5: memref<1x1xf32, #tpu.memory_space<vmem>>, %arg6: memref<1x1xf32, #tpu.memory_space<vmem>>) attributes {dimension_semantics = [#tpu.dimension_semantics<arbitrary>], iteration_bounds = array<i64: 1>, scalar_prefetch = 0 : i64, scratch_operands = 1 : i64, tpu.core_type = #tpu.core_type<tc>, window_params = [{transform_indices = @transform_0, window_bounds = array<i64: 32, 32>}, {pipeline_mode = #tpu.pipeline_mode<synchronous>, transform_indices = @transform_1, window_bounds = array<i64: 32, 32>}, {transform_indices = @transform_2, window_bounds = array<i64: 32, 8>}, {pipeline_mode = #tpu.pipeline_mode<synchronous>, transform_indices = @transform_3, window_bounds = array<i64: 32, 8>}, {pipeline_mode = #tpu.pipeline_mode<synchronous>, transform_indices = @transform_4, window_bounds = array<i64: 1, 1>}]} {
    %c0_i32 = arith.constant 0 : i32
    %0 = arith.cmpi eq, %arg0, %c0_i32 : i32
    %1 = arith.extui %0 : i1 to i32
    %c0_i32_0 = arith.constant 0 : i32
    %2 = arith.cmpi ne, %1, %c0_i32_0 : i32
    scf.if %2 {
      %cst_28 = arith.constant 0.000000e+00 : f32
      %58 = vector.broadcast %cst_28 : f32 to vector<1x1xf32>
      %c0_29 = arith.constant 0 : index
      %c0_30 = arith.constant 0 : index
      %59 = vector.load %arg6[%c0_29, %c0_30] : memref<1x1xf32, #tpu.memory_space<vmem>>, vector<1x1xf32>
      tpu.vector_store %arg6[%c0_29, %c0_30], %58 {strides = array<i32>} : memref<1x1xf32, #tpu.memory_space<vmem>>, vector<1x1xf32>,
    } else {
    }
    %c0 = arith.constant 0 : index
    %c0_1 = arith.constant 0 : index
    %3 = vector.load %arg1[%c0, %c0_1] : memref<32x32xbf16, #tpu.memory_space<vmem>>, vector<32x32xbf16>
    %cst = arith.constant 1.000980e-02 : bf16
    %4 = vector.broadcast %cst : bf16 to vector<32x32xbf16>
    %5 = arith.mulf %3, %4 : vector<32x32xbf16>
    %c0_2 = arith.constant 0 : index
    %c0_3 = arith.constant 0 : index
    %6 = vector.load %arg2[%c0_2, %c0_3] : memref<32x32xbf16, #tpu.memory_space<vmem>>, vector<32x32xbf16>
    %cst_4 = arith.constant dense<0.000000e+00> : vector<32x32xf32>
    %7 = tpu.matmul %5, %6, %cst_4 {dimension_numbers = #tpu.dot_dimension_numbers<[1], [1], [0], [0], [0, 0, 1, 0], [], []>} : vector<32x32xbf16>, vector<32x32xbf16>, vector<32x32xf32> -> vector<32x32xf32>
    %c32_i32 = arith.constant 32 : i32
    %8 = arith.muli %arg0, %c32_i32 : i32
    %9 = tpu.iota {dimensions = array<i32: 0>} : vector<32x32xi32>
    %10 = vector.broadcast %8 : i32 to vector<32x32xi32>
    %11 = arith.addi %10, %9 : vector<32x32xi32>
    %12 = tpu.iota {dimensions = array<i32: 1>} : vector<32x32xi32>
    %13 = arith.cmpi ne, %11, %12 : vector<32x32xi32>
    %c0_5 = arith.constant 0 : index
    %c0_6 = arith.constant 0 : index
    %14 = vector.load %arg3[%c0_5, %c0_6] : memref<32x8xbf16, #tpu.memory_space<vmem>>, vector<32x8xbf16>
    %c0_7 = arith.constant 0 : index
    %c0_8 = arith.constant 0 : index
    %15 = vector.load %arg4[%c0_7, %c0_8] : memref<32x8xbf16, #tpu.memory_space<vmem>>, vector<32x8xbf16>
    %cst_9 = arith.constant dense<0.000000e+00> : vector<32x32xf32>
    %16 = tpu.matmul %14, %15, %cst_9 {dimension_numbers = #tpu.dot_dimension_numbers<[1], [1], [0], [0], [0, 0, 1, 0], [], []>} : vector<32x8xbf16>, vector<32x8xbf16>, vector<32x32xf32> -> vector<32x32xf32>
    %cst_10 = arith.constant 1.000000e+00 : f32
    %17 = vector.broadcast %cst_10 : f32 to vector<32x32xf32>
    %18 = arith.cmpf oge, %16, %17 : vector<32x32xf32>
    %19 = arith.andi %18, %13 : vector<32x32xi1>
    %cst_11 = arith.constant dense<0xFF800000> : vector<32xf32>
    %20 = vector.multi_reduction <maximumf>, %7, %cst_11 [1] : vector<32x32xf32> to vector<32xf32>
    %21 = vector.shape_cast %20 : vector<32xf32> to vector<32x1xf32>
    %22 = vector.broadcast %21 : vector<32x1xf32> to vector<32x32xf32>
    %23 = arith.subf %7, %22 : vector<32x32xf32>
    %24 = math.exp %23 : vector<32x32xf32>
    %cst_12 = arith.constant 0.000000e+00 : f32
    %25 = vector.broadcast %cst_12 : f32 to vector<32x32xf32>
    %26 = arith.select %13, %24, %25 : vector<32x32xi1>, vector<32x32xf32>
    %cst_13 = arith.constant dense<0.000000e+00> : vector<32xf32>
    %27 = vector.multi_reduction <add>, %26, %cst_13 [1] : vector<32x32xf32> to vector<32xf32>
    %28 = vector.shape_cast %27 : vector<32xf32> to vector<32x1xf32>
    %cst_14 = arith.constant 9.99999996E-13 : f32
    %29 = vector.broadcast %cst_14 : f32 to vector<32x1xf32>
    %30 = arith.addf %28, %29 : vector<32x1xf32>
    %31 = math.log %30 : vector<32x1xf32>
    %32 = vector.broadcast %31 : vector<32x1xf32> to vector<32x32xf32>
    %33 = arith.subf %23, %32 : vector<32x32xf32>
    %cst_15 = arith.constant 0.000000e+00 : f32
    %34 = vector.broadcast %cst_15 : f32 to vector<32x32xf32>
    %35 = arith.select %19, %33, %34 : vector<32x32xi1>, vector<32x32xf32>
    %cst_16 = arith.constant dense<0.000000e+00> : vector<32xf32>
    %36 = vector.multi_reduction <add>, %35, %cst_16 [1] : vector<32x32xf32> to vector<32xf32>
    %37 = vector.shape_cast %36 : vector<32xf32> to vector<32x1xf32>
    %cst_17 = arith.constant 1.000000e+00 : f32
    %cst_18 = arith.constant 0.000000e+00 : f32
    %38 = vector.broadcast %cst_17 : f32 to vector<32x32xf32>
    %39 = vector.broadcast %cst_18 : f32 to vector<32x32xf32>
    %40 = arith.select %19, %38, %39 : vector<32x32xi1>, vector<32x32xf32>
    %cst_19 = arith.constant dense<0.000000e+00> : vector<32xf32>
    %41 = vector.multi_reduction <add>, %40, %cst_19 [1] : vector<32x32xf32> to vector<32xf32>
    %42 = vector.shape_cast %41 : vector<32xf32> to vector<32x1xf32>
    %cst_20 = arith.constant 9.99999996E-13 : f32
    %43 = vector.broadcast %cst_20 : f32 to vector<32x1xf32>
    %44 = arith.addf %42, %43 : vector<32x1xf32>
    %45 = tpu.reciprocal %44 {approx = true} : vector<32x1xf32> -> vector<32x1xf32>
    %46 = arith.mulf %37, %45 : vector<32x1xf32>
    %c0_21 = arith.constant 0 : index
    %c0_22 = arith.constant 0 : index
    %47 = vector.load %arg6[%c0_21, %c0_22] : memref<1x1xf32, #tpu.memory_space<vmem>>, vector<1x1xf32>
    %48 = vector.shape_cast %46 : vector<32x1xf32> to vector<1x32x1xf32>
    %cst_23 = arith.constant dense<0.000000e+00> : vector<1xf32>
    %49 = vector.multi_reduction <add>, %48, %cst_23 [1, 2] : vector<1x32x1xf32> to vector<1xf32>
    %50 = vector.shape_cast %49 : vector<1xf32> to vector<1x1x1xf32>
    %51 = vector.extract %50[0, 0, 0] : f32 from vector<1x1x1xf32>
    %52 = vector.broadcast %51 : f32 to vector<1x1xf32>
    %53 = arith.addf %47, %52 : vector<1x1xf32>
    %c0_24 = arith.constant 0 : index
    %c0_25 = arith.constant 0 : index
    %54 = vector.load %arg6[%c0_24, %c0_25] : memref<1x1xf32, #tpu.memory_space<vmem>>, vector<1x1xf32>
    tpu.vector_store %arg6[%c0_24, %c0_25], %53 {strides = array<i32>} : memref<1x1xf32, #tpu.memory_space<vmem>>, vector<1x1xf32>,
    %c0_i32_26 = arith.constant 0 : i32
    %55 = arith.cmpi eq, %arg0, %c0_i32_26 : i32
    %56 = arith.extui %55 : i1 to i32
    %c0_i32_27 = arith.constant 0 : i32
    %57 = arith.cmpi ne, %56, %c0_i32_27 : i32
    scf.if %57 {
      %c0_28 = arith.constant 0 : index
      %c0_29 = arith.constant 0 : index
      %58 = vector.load %arg6[%c0_28, %c0_29] : memref<1x1xf32, #tpu.memory_space<vmem>>, vector<1x1xf32>
      %cst_30 = arith.constant -3.125000e-02 : f32
      %59 = vector.broadcast %cst_30 : f32 to vector<1x1xf32>
      %60 = arith.mulf %58, %59 : vector<1x1xf32>
      %c0_31 = arith.constant 0 : index
      %c0_32 = arith.constant 0 : index
      %61 = vector.load %arg5[%c0_31, %c0_32] : memref<1x1xf32, #tpu.memory_space<vmem>>, vector<1x1xf32>
      tpu.vector_store %arg5[%c0_31, %c0_32], %60 {strides = array<i32>} : memref<1x1xf32, #tpu.memory_space<vmem>>, vector<1x1xf32>,
    } else {
    }
    return
  }
  func.func @transform_0(%arg0: i32) -> (i32, i32) {
    %c0_i32 = arith.constant 0 : i32
    %c0_i32_0 = arith.constant 0 : i32
    return %arg0, %c0_i32 : i32, i32
  }
  func.func @transform_1(%arg0: i32) -> (i32, i32) {
    %c0_i32 = arith.constant 0 : i32
    %c0_i32_0 = arith.constant 0 : i32
    %c0_i32_1 = arith.constant 0 : i32
    return %c0_i32, %c0_i32_0 : i32, i32
  }
  func.func @transform_2(%arg0: i32) -> (i32, i32) {
    %c0_i32 = arith.constant 0 : i32
    %c0_i32_0 = arith.constant 0 : i32
    return %arg0, %c0_i32 : i32, i32
  }
  func.func @transform_3(%arg0: i32) -> (i32, i32) {
    %c0_i32 = arith.constant 0 : i32
    %c0_i32_0 = arith.constant 0 : i32
    %c0_i32_1 = arith.constant 0 : i32
    return %c0_i32, %c0_i32_0 : i32, i32
  }
  func.func @transform_4(%arg0: i32) -> (i32, i32) {
    %c0_i32 = arith.constant 0 : i32
    %c0_i32_0 = arith.constant 0 : i32
    %c0_i32_1 = arith.constant 0 : i32
    return %c0_i32, %c0_i32_0 : i32, i32
  }
}

</mosaic_0001>

<bundles_post_ra>
// kernel: supcon_loss.1
= control target key start
LH: loop header
LB: loop body
LE: loop exit
PB: predicated region body
PF: predicated region fallthrough
CT: control target
= control target key end

     0   :  { %vm58_vm0 = vcmask 261120   ;;  %s630_s0 = inlined_call_operand.vmem [shape: bf16[32,32], index: 0, kind: input, shape index: {}, may-alias: {0,1}]   ;;  %s631_s1 = inlined_call_operand.vmem [shape: bf16[32,32], index: 1, kind: input, shape index: {}, may-alias: {0,1}]   ;;  %s632_s2 = inlined_call_operand.vmem [shape: bf16[32,8], index: 2, kind: input, shape index: {}, may-alias: {2,3}]   ;;  %s633_s3 = inlined_call_operand.vmem [shape: bf16[32,8], index: 3, kind: input, shape index: {}, may-alias: {2,3}]   ;;  %s634_s4 = inlined_call_operand.hbm [shape: f32[1,1], index: 4, kind: output, shape index: {}]  }
   0x1   :  { %v421_v0 = vld [vmem:[%s631_s1] sm:$0xff]   ;;  %v422_v1 = vld [vmem:[%s631_s1 + $0x8] sm:$0xff]  }
   0x2   :  { %413 = vmatprep.subr.msk.bf16.mxu0 %vm58_vm0, %v421_v0  ;;  %v66_v2 = vsel %vm58_vm0, %v421_v0, 0  ;;  %v26_v3 = vld [vmem:[%s630_s0] sm:$0xf]  ;;  %v27_v4 = vld [vmem:[%s630_s0 + $0x4] sm:$0xf]  ;;  %v69_v10 = vsel %vm58_vm0, %v422_v1, 0 }
   0x3   :  { %398 = vmatpush3.bf16.xpose.msra.mxu0 %v66_v2  ;;  %v30_v5 = vmul.bf16 1009007652, %v26_v3  ;;  %v31_v6 = vmul.bf16 1009007652, %v27_v4  ;;  %v28_v8 = vld [vmem:[%s630_s0 + $0x8] sm:$0xf] }
   0x4   :  { %414 = vmatprep.subr.msk.bf16.mxu0 %vm58_vm0, %v422_v1  ;;  %v29_v9 = vld [vmem:[%s630_s0 + $0xc] sm:$0xf] }
   0x5   :  { %v377_v7 = vcombine.low %v30_v5, %v31_v6 }
   0x7   :  { %401 = vmatprep.mubr.msk.bf16.mxu0 %vm58_vm0, %v377_v7 }
   0x8   :  { %9 = vsyncpa [#allocation4], 0  ;;  %v32_v11 = vmul.bf16 1009007652, %v28_v8  ;;  %v33_v12 = vmul.bf16 1009007652, %v29_v9  ;;  %v121_v39 = vlaneseq }
   0x9   :  { %v423_v14 = vld [vmem:[%s633_s3] sm:$0xff]   ;;  %vm165_vm1 = vcmask 64512   ;;  %v424_v15 = vld [vmem:[%s633_s3 + $0x8] sm:$0xff]   ;;  %v475_v1 = vmov 0.0   ;;  %vm336_vm14 = vcmask 7168   ;;  %vm24_vm15 = vcmask 0  }
   0xa   :  { %v378_v13 = vcombine.low %v32_v11, %v33_v12  ;;  %v425_v16 = vld [vmem:[%s632_s2] sm:$0xff]   ;;  %415 = vmatprep.subr.msk.bf16.mxu1 %vm165_vm1, %v423_v14  ;;  %v173_v17 = vsel %vm165_vm1, %v423_v14, 0  ;;  %v176_v18 = vsel %vm165_vm1, %v424_v15, 0  ;;  %v426_v19 = vld [vmem:[%s632_s2 + $0x8] sm:$0xff]   ;;  %v122_v45 = vshrl.u32 %v121_v39, 7  ;;  %s476_s3 = smov [#allocation3]  }
   0xb   :  { %400 = vmatpush3.bf16.xpose.msra.mxu0 %v69_v10  ;;  %409 = vmatprep.mubr.msk.bf16.mxu1 %vm165_vm1, %v425_v16  ;;  %v132_v46 = vand.u32 127, %v121_v39  ;;  %25 = vst.msk [vmem:[#allocation2] sm:$0x1] %vm24_vm15, %v475_v1  ;;  %s369_s7 = sshll.u32 %s476_s3, 4  ;;  %s370_s7 = int_to_ptr.vmem [resolvable:$true] %s369_s7 }
   0xc   :  { %406 = vmatpush3.bf16.xpose.msra.mxu1 %v173_v17  ;;  %v124_v47 = vadd.s32 16, %v122_v45  ;;  %v123_v48 = vadd.s32 8, %v122_v45  ;;  %v125_v51 = vadd.s32 24, %v122_v45  ;;  %s451_s8 = scalar_lea.vmem %s370_s7, 16  ;;  %s455_s9 = scalar_lea.vmem %s370_s7, 32 }
   0xd   :  { %416 = vmatprep.subr.msk.bf16.mxu1 %vm165_vm1, %v424_v15  ;;  %vm133_vm2 = vcmp.ne.s32.totalorder %v122_v45, %v132_v46  ;;  %p452_p0 = scmp.ne.s32.totalorder %s370_s7, %s451_s8  ;;  %p456_p1 = scmp.lt.s32.totalorder %s370_s7, %s370_s7 }
   0xe   :  { %vm135_vm3 = vcmp.ne.s32.totalorder %v124_v47, %v132_v46  ;;  %vm134_vm4 = vcmp.ne.s32.totalorder %v123_v48, %v132_v46  ;;  %vm136_vm5 = vcmp.ne.s32.totalorder %v125_v51, %v132_v46  ;;  %p457_p2 = scmp.lt.s32.totalorder %s455_s9, %s451_s8 }
  0x10   :  { %p458_p3 = por %p457_p2, %p456_p1 }
  0x12   :  { %402 = vmatmul.mubr.msk.bf16.vlgmr.msra.gmra.mrb[0].mxu0 %vm58_vm0, %v378_v13  ;;  %p459_p4 = pnand %p458_p3, %p452_p0 }
  0x14   :  { %408 = vmatpush3.bf16.xpose.msra.mxu1 %v176_v18 }
  0x1b   :  { %410 = vmatmul.mubr.msk.bf16.vlgmr.msra.gmra.mrb[0].mxu1 %vm165_vm1, %v426_v19 }
  0xe5   :  { %v403_v20 = vpop.f32.mrb[0].mxu0 }
  0xe6   :  { %v105_v21 = vpop.f32.mrb[1].mxu0  ;;  %v241_v22 = vsel %vm58_vm0, %v403_v20, -inf }
  0xe7   :  { %242 = vmax.xlane.f32.xlu1 %v241_v22  ;;  %v404_v23 = vpop.f32.mrb[2].mxu0  ;;  %v235_v24 = vsel %vm58_vm0, %v105_v21, -inf }
  0xe8   :  { %236 = vmax.xlane.f32.xlu0 %v235_v24  ;;  %v108_v25 = vpop.f32.mrb[3].mxu0  ;;  %v244_v26 = vsel %vm58_vm0, %v404_v23, -inf }
  0xe9   :  { %v238_v27 = vsel %vm58_vm0, %v108_v25, -inf }
  0xeb   :  { %245 = vmax.xlane.f32.xlu1 %v244_v26 }
  0xec   :  { %239 = vmax.xlane.f32.xlu0 %v238_v27 }
  0xee   :  { %v411_v28 = vpop.f32.mrb[0].mxu1 }
  0xef   :  { %v212_v29 = vpop.f32.mrb[1].mxu1  ;;  %vm229_vm9 = vcmp.ge.f32.partialorder %v411_v28, 1.0 }
  0xf0   :  { %v412_v30 = vpop.f32.mrb[2].mxu1  ;;  %vm227_vm6 = vcmp.ge.f32.partialorder %v212_v29, 1.0  ;;  %vm573_vm12 = vmand %vm229_vm9, %vm135_vm3 }
  0xf1   :  { %v215_v31 = vpop.f32.mrb[3].mxu1  ;;  %vm563_vm8 = vmand %vm227_vm6, %vm133_vm2  ;;  %vm230_vm11 = vcmp.ge.f32.partialorder %v412_v30, 1.0  ;;  %v309_v8 = vsel %vm573_vm12, 1.0, %v475_v1 }
  0xf2   :  { %vm228_vm7 = vcmp.ge.f32.partialorder %v215_v31, 1.0  ;;  %v307_v3 = vsel %vm563_vm8, 1.0, %v475_v1  ;;  %vm584_vm13 = vmand %vm230_vm11, %vm136_vm5  ;;  %v317_v10 = vsel %vm58_vm0, %v309_v8, 0.0 }
  0xf3   :  { %vm568_vm10 = vmand %vm228_vm7, %vm134_vm4  ;;  %v311_v6 = vsel %vm58_vm0, %v307_v3, 0.0  ;;  %v310_v7 = vsel %vm584_vm13, 1.0, %v475_v1 }
  0xf4   :  { %v308_v2 = vsel %vm568_vm10, 1.0, %v475_v1  ;;  %v320_v9 = vsel %vm58_vm0, %v310_v7, 0.0 }
  0xf5   :  { %v314_v5 = vsel %vm58_vm0, %v308_v2, 0.0 }
 0x174   :  { %v243_v32 = vpop.xlane.xlu1 %242 }
 0x175   :  { %v542_v33 = vsub.f32 %v403_v20, %v243_v32  ;;  %v237_v34 = vpop.xlane.xlu0 %236 }
 0x176   :  { %v544_v35 = vsub.f32 %v105_v21, %v237_v34 }
 0x177   :  { %v255_v36 = vmul.f32 1.442695, %v542_v33 }
 0x178   :  { %v251_v37 = vmul.f32 1.442695, %v544_v35  ;;  %v246_v38 = vpop.xlane.xlu1 %245 }
 0x179   :  { %427 = vpow2.f32 %v255_v36  ;;  %v548_v40 = vsub.f32 %v404_v23, %v246_v38  ;;  %v240_v41 = vpop.xlane.xlu0 %239 }
 0x17a   :  { %429 = vpow2.f32 %v251_v37  ;;  %v550_v42 = vsub.f32 %v108_v25, %v240_v41 }
 0x17b   :  { %v257_v43 = vmul.f32 1.442695, %v548_v40 }
 0x17c   :  { %v253_v44 = vmul.f32 1.442695, %v550_v42 }
 0x17d   :  { %431 = vpow2.f32 %v257_v43 }
 0x17e   :  { %433 = vpow2.f32 %v253_v44 }
 0x183   :  { %v428_v49 = vpop.eup %427 }
 0x184   :  { %v430_v50 = vpop.eup %429  ;;  %v261_v55 = vsel %vm135_vm3, %v428_v49, 0.0 }
 0x185   :  { %v259_v52 = vsel %vm133_vm2, %v430_v50, 0.0  ;;  %v269_v58 = vsel %vm58_vm0, %v261_v55, 0.0 }
 0x186   :  { %v263_v53 = vsel %vm58_vm0, %v259_v52, 0.0 }
 0x187   :  { %v432_v54 = vpop.eup %431  ;;  %264 = vadd.xlane.f32.xlu0 %v263_v53 }
 0x188   :  { %v434_v56 = vpop.eup %433  ;;  %v262_v60 = vsel %vm136_vm5, %v432_v54, 0.0 }
 0x189   :  { %v260_v57 = vsel %vm134_vm4, %v434_v56, 0.0  ;;  %v272_v61 = vsel %vm58_vm0, %v262_v60, 0.0 }
 0x18a   :  { %v266_v59 = vsel %vm58_vm0, %v260_v57, 0.0 }
 0x18b   :  { %270 = vadd.xlane.f32.xlu0 %v269_v58  ;;  %267 = vadd.xlane.f32.xlu1 %v266_v59 }
 0x18f   :  { %273 = vadd.xlane.f32.xlu1 %v272_v61  ;;  %312 = vadd.xlane.f32.xlu0 %v311_v6 }
 0x193   :  { %315 = vadd.xlane.f32.xlu1 %v314_v5  ;;  %318 = vadd.xlane.f32.xlu0 %v317_v10  ;;  %v335_v10 = vld [vmem:[#allocation2] sm:$0x1] }
 0x197   :  { %321 = vadd.xlane.f32.xlu1 %v320_v9 }
 0x214   :  { %v265_v11 = vpop.xlane.xlu0 %264 }
 0x215   :  { %v275_v12 = vadd.f32 1e-12, %v265_v11 }
 0x217   :  { %435 = vlog2.f32 %v275_v12 }
 0x218   :  { %v268_v13 = vpop.xlane.xlu1 %267  ;;  %v271_v14 = vpop.xlane.xlu0 %270 }
 0x219   :  { %v276_v15 = vadd.f32 1e-12, %v268_v13  ;;  %v277_v16 = vadd.f32 1e-12, %v271_v14 }
 0x21b   :  { %437 = vlog2.f32 %v276_v15 }
 0x21c   :  { %439 = vlog2.f32 %v277_v16  ;;  %v274_v17 = vpop.xlane.xlu1 %273  ;;  %v313_v39 = vpop.xlane.xlu0 %312 }
 0x21d   :  { %v278_v18 = vadd.f32 1e-12, %v274_v17 }
 0x21f   :  { %441 = vlog2.f32 %v278_v18 }
 0x220   :  { %v316_v41 = vpop.xlane.xlu1 %315  ;;  %v319_v43 = vpop.xlane.xlu0 %318 }
 0x221   :  { %v436_v19 = vpop.eup %435  ;;  %v324_v44 = vadd.f32 1e-12, %v316_v41  ;;  %v325_v46 = vadd.f32 1e-12, %v319_v43 }
 0x222   :  { %v280_v20 = vmul.f32 0.6931472, %v436_v19 }
 0x224   :  { %v287_v21 = vsub.f32 %v544_v35, %v280_v20  ;;  %v322_v45 = vpop.xlane.xlu1 %321 }
 0x225   :  { %v438_v22 = vpop.eup %437  ;;  %v326_v47 = vadd.f32 1e-12, %v322_v45 }
 0x226   :  { %v440_v23 = vpop.eup %439  ;;  %v282_v24 = vmul.f32 0.6931472, %v438_v22  ;;  %v291_v25 = vsel %vm563_vm8, %v287_v21, 0.0 }
 0x227   :  { %v284_v26 = vmul.f32 0.6931472, %v440_v23  ;;  %v295_v27 = vsel %vm58_vm0, %v291_v25, 0.0 }
 0x228   :  { %296 = vadd.xlane.f32.xlu0 %v295_v27  ;;  %v288_v28 = vsub.f32 %v550_v42, %v282_v24  ;;  %v323_v42 = vadd.f32 1e-12, %v313_v39 }
 0x229   :  { %v442_v29 = vpop.eup %441  ;;  %v289_v30 = vsub.f32 %v542_v33, %v284_v26 }
 0x22a   :  { %v286_v31 = vmul.f32 0.6931472, %v442_v29  ;;  %v292_v32 = vsel %vm568_vm10, %v288_v28, 0.0  ;;  %443 = vrcp.f32 %v323_v42 }
 0x22b   :  { %v298_v34 = vsel %vm58_vm0, %v292_v32, 0.0  ;;  %v293_v35 = vsel %vm573_vm12, %v289_v30, 0.0  ;;  %445 = vrcp.f32 %v324_v44 }
 0x22c   :  { %299 = vadd.xlane.f32.xlu1 %v298_v34  ;;  %v301_v36 = vsel %vm58_vm0, %v293_v35, 0.0  ;;  %v290_v37 = vsub.f32 %v548_v40, %v286_v31  ;;  %447 = vrcp.f32 %v325_v46 }
 0x22d   :  { %302 = vadd.xlane.f32.xlu0 %v301_v36  ;;  %449 = vrcp.f32 %v326_v47 }
 0x22e   :  { %v294_v38 = vsel %vm584_vm13, %v290_v37, 0.0 }
 0x22f   :  { %v304_v33 = vsel %vm58_vm0, %v294_v38, 0.0 }
 0x230   :  { %305 = vadd.xlane.f32.xlu1 %v304_v33 }
 0x234   :  { %v444_v40 = vpop.eup %443 }
 0x235   :  { %v446_v50 = vpop.eup %445 }
 0x236   :  { %v448_v52 = vpop.eup %447 }
 0x237   :  { %v450_v58 = vpop.eup %449 }
 0x2b5   :  { %v297_v48 = vpop.xlane.xlu0 %296 }
 0x2b6   :  { %v331_v49 = vmul.f32 %v444_v40, %v297_v48 }
 0x2b8   :  { %v337_v56 = vsel %vm336_vm14, %v331_v49, 0.0 }
 0x2b9   :  { %v300_v51 = vpop.xlane.xlu1 %299 }
 0x2ba   :  { %v332_v53 = vmul.f32 %v446_v50, %v300_v51  ;;  %v303_v54 = vpop.xlane.xlu0 %302 }
 0x2bb   :  { %v333_v55 = vmul.f32 %v448_v52, %v303_v54 }
 0x2bc   :  { %v338_v57 = vsel %vm336_vm14, %v332_v53, 0.0 }
 0x2bd   :  { %v339_v59 = vadd.f32 %v338_v57, %v337_v56  ;;  %v306_v60 = vpop.xlane.xlu1 %305  ;;  %v340_v61 = vsel %vm336_vm14, %v333_v55, 0.0 }
 0x2be   :  { %v334_v62 = vmul.f32 %v450_v58, %v306_v60 }
 0x2bf   :  { %v341_v63 = vadd.f32 %v340_v61, %v339_v59 }
 0x2c0   :  { %v342_v0 = vsel %vm336_vm14, %v334_v62, 0.0 }
 0x2c1   :  { %v343_v2 = vadd.f32 %v342_v0, %v341_v63 }
 0x2c3   :  { %344 = vadd.xlane.f32.xlu0 %v343_v2 }
 0x350   :  { %v345_v3 = vpop.xlane.xlu0 %344 }
 0x351   :  { %v346_v4 = vrot.slane %v345_v3, 4 }
 0x353   :  { %v347_v5 = vadd.f32 %v346_v4, %v345_v3 }
 0x355   :  { %v348_v6 = vrot.slane %v347_v5, 2 }
 0x357   :  { %v349_v7 = vadd.f32 %v348_v6, %v347_v5 }
 0x359   :  { %v350_v8 = vrot.slane %v349_v7, 1 }
 0x35b   :  { %v351_v9 = vadd.f32 %v350_v8, %v349_v7 }
 0x35d   :  { %417 = vpush %v351_v9 }
 0x38e   :  { %s418_s2 = spop %417 }
 0x38f   :  { %v353_v11 = vstv %s418_s2 }
 0x390   :  { %v354_v12 = vadd.f32 %v353_v11, %v335_v10 }
 0x392   :  { %356 = vst.msk [vmem:[#allocation2] sm:$0x1] %vm24_vm15, %v354_v12 }
 0x399   :  { %v360_v13 = vld [vmem:[#allocation2] sm:$0x1] }
 0x39a   :  { %v361_v14 = vmul.f32 -0.03125, %v360_v13 }
 0x39c   :  { %362 = vst.msk [vmem:[#allocation3] sm:$0x1] %vm24_vm15, %v361_v14 }
 0x39d   :  { %462 = shalt.err (!%p459_p4)
}
 0x39e   :  { %s463_s12 = scalar_lea.hbm %s634_s4, 16 }
 0x39f   :  { %p464_p5 = scmp.ne.s32.totalorder %s634_s4, %s463_s12  ;;  %p467_p6 = scmp.lt.u32.totalorder %s463_s12, %s634_s4 }
 0x3a1   :  { %p469_p7 = pnand %p467_p6, %p464_p5 }
 0x3a3   :  { %472 = shalt.err (!%p469_p7)
}
 0x3a4   :  { %372 = dma.vmem_to_hbm [thread:$0]  %s370_s7, 16, %s634_s4, [#allocation4]  }
 0x3a5   :  { %473 = dma.done.wait [#allocation4], 16  }
 0x3a6   :  { %474 = vsyncadd [#allocation4], 4294967280 }
 0x3a7   :  { %376 = vsyncpa [#allocation4], 1 }

</bundles_post_ra>
